<compile_context>
chip_gen: v5e
topology: v5e:2x2
jax: 0.10.0
libtpu: 0.0.40
codegen_flags: <defaults>
</compile_context>

<pallas_src>
import jax
import jax.numpy as jnp
from jax.experimental import pallas as pl
from jax.experimental.pallas import tpu as pltpu

IN_DIM = 62 * 5          # 310  (matches din.x.view(-1, 62*5))
IN_PAD = 384             # 3 * 128 lanes, zero-padded
H1, H2, H3, OUT = 128, 256, 64, 4
TB_DEFAULT = 512         # batch tile: multiple of 8/128/256 (v5e/v6e/v7x MXU rows)


def _round_up(n, m):
    return (n + m - 1) // m * m


def _mlp_kernel(x_ref,
                w1_ref, b1_ref,
                w2_ref, b2_ref,
                w3_ref, b3_ref,
                w4_ref, b4_ref,
                o_ref):
    # fc1 + sigmoid  (bf16 operands, f32 accumulate / activation)
    h = jnp.dot(x_ref[...], w1_ref[...],
                preferred_element_type=jnp.float32) + b1_ref[...]
    h = jax.nn.sigmoid(h)

    # fc2 + sigmoid
    h = jnp.dot(h.astype(jnp.bfloat16), w2_ref[...],
                preferred_element_type=jnp.float32) + b2_ref[...]
    h = jax.nn.sigmoid(h)

    # fc3 + sigmoid
    h = jnp.dot(h.astype(jnp.bfloat16), w3_ref[...],
                preferred_element_type=jnp.float32) + b3_ref[...]
    h = jax.nn.sigmoid(h)

    # fc4 (no activation)
    out = jnp.dot(h.astype(jnp.bfloat16), w4_ref[...],
                  preferred_element_type=jnp.float32) + b4_ref[...]
    o_ref[...] = out.astype(o_ref.dtype)


def mlp_forward(x, params, *, tb=TB_DEFAULT):
    """x: (B, 62, 5) or (B, 310); params: f32 weights (in,out) and biases (1,out)."""
    x2d = x.reshape(-1, IN_DIM).astype(jnp.float32)
    B = x2d.shape[0]

    # Tile size: large (512) for big batches, shrink (mult. of 8) for tiny ones.
    tb = min(tb, _round_up(B, 8))
    Bp = _round_up(B, tb)
    grid = (Bp // tb,)

    # Zero-pad batch -> Bp and features 310 -> 384; cast matmul operands to bf16.
    xp = jnp.zeros((Bp, IN_PAD), jnp.bfloat16)
    xp = xp.at[:B, :IN_DIM].set(x2d.astype(jnp.bfloat16))

    w1 = jnp.zeros((IN_PAD, H1), jnp.bfloat16)
    w1 = w1.at[:IN_DIM, :].set(params["w1"].astype(jnp.bfloat16))
    w2 = params["w2"].astype(jnp.bfloat16)
    w3 = params["w3"].astype(jnp.bfloat16)
    w4 = params["w4"].astype(jnp.bfloat16)
    b1 = params["b1"].astype(jnp.float32)
    b2 = params["b2"].astype(jnp.float32)
    b3 = params["b3"].astype(jnp.float32)
    b4 = params["b4"].astype(jnp.float32)

    # Weights/biases: full blocks, constant index_map -> VMEM-resident across grid.
    wspec = lambda shape: pl.BlockSpec(shape, lambda i: (0, 0))

    out = pl.pallas_call(
        _mlp_kernel,
        out_shape=jax.ShapeDtypeStruct((Bp, OUT), jnp.float32),
        grid=grid,
        in_specs=[
            pl.BlockSpec((tb, IN_PAD), lambda i: (i, 0)),   # streamed x tile
            wspec((IN_PAD, H1)), wspec((1, H1)),
            wspec((H1, H2)),     wspec((1, H2)),
            wspec((H2, H3)),     wspec((1, H3)),
            wspec((H3, OUT)),    wspec((1, OUT)),
        ],
        out_specs=pl.BlockSpec((tb, OUT), lambda i: (i, 0)),
        compiler_params=pltpu.CompilerParams(
            dimension_semantics=("parallel",),      # megacore / v7x 2-TC sharding
            vmem_limit_bytes=32 << 20),             # actual need is a few MiB
    )(xp, w1, b1, w2, b2, w3, b3, w4, b4)

    return out[:B]


def init_params(key):
    """Deterministic init mimicking PyTorch Linear default (U[-1/sqrt(in), 1/sqrt(in)])."""
    dims = [(IN_DIM, H1), (H1, H2), (H2, H3), (H3, OUT)]
    params = {}
    for i, (fan_in, fan_out) in enumerate(dims, start=1):
        key, kw, kb = jax.random.split(key, 3)
        bound = 1.0 / jnp.sqrt(jnp.float32(fan_in))
        params[f"w{i}"] = jax.random.uniform(
            kw, (fan_in, fan_out), jnp.float32, minval=-bound, maxval=bound)
        params[f"b{i}"] = jax.random.uniform(
            kb, (1, fan_out), jnp.float32, minval=-bound, maxval=bound)
    return params


def mlp_reference(x, params):
    """Pure-JAX f32 reference for correctness checking."""
    h = x.reshape(-1, IN_DIM).astype(jnp.float32)
    h = jax.nn.sigmoid(h @ params["w1"] + params["b1"])
    h = jax.nn.sigmoid(h @ params["w2"] + params["b2"])
    h = jax.nn.sigmoid(h @ params["w3"] + params["b3"])
    return h @ params["w4"] + params["b4"]


if __name__ == "__main__":
    key = jax.random.PRNGKey(0)
    key, kx1, kx2 = jax.random.split(key, 3)
    params = init_params(key)

    # Case 1: small batch (exact tile)
    B1 = 8
    x1 = jax.random.normal(kx1, (B1, 62, 5), dtype=jnp.float32)
    out1 = jax.block_until_ready(mlp_forward(x1, params))
    ref1 = mlp_reference(x1, params)
    assert out1.shape == (B1, OUT), out1.shape
    # bf16 matmul operands vs f32 reference -> loosened tolerance
    assert jnp.allclose(out1, ref1, atol=3e-2, rtol=3e-2), "mismatch vs reference (B=8)"

    # Case 2: batch not a multiple of the tile (exercises batch padding path)
    B2 = 23
    x2 = jax.random.normal(kx2, (B2, 62, 5), dtype=jnp.float32)
    out2 = jax.block_until_ready(mlp_forward(x2, params))
    ref2 = mlp_reference(x2, params)
    assert out2.shape == (B2, OUT), out2.shape
    assert jnp.allclose(out2, ref2, atol=3e-2, rtol=3e-2), "mismatch vs reference (B=23)"

    print("KERNEL_OK")
</pallas_src>

<mosaic_0001>
module attributes {stable_mosaic.version = 11 : i64} {
  func.func @_mlp_kernel(%arg0: i32, %arg1: memref<8x384xbf16, #tpu.memory_space<vmem>>, %arg2: memref<384x128xbf16, #tpu.memory_space<vmem>>, %arg3: memref<1x128xf32, #tpu.memory_space<vmem>>, %arg4: memref<128x256xbf16, #tpu.memory_space<vmem>>, %arg5: memref<1x256xf32, #tpu.memory_space<vmem>>, %arg6: memref<256x64xbf16, #tpu.memory_space<vmem>>, %arg7: memref<1x64xf32, #tpu.memory_space<vmem>>, %arg8: memref<64x4xbf16, #tpu.memory_space<vmem>>, %arg9: memref<1x4xf32, #tpu.memory_space<vmem>>, %arg10: memref<8x4xf32, #tpu.memory_space<vmem>>) attributes {dimension_semantics = [#tpu.dimension_semantics<parallel>], iteration_bounds = array<i64: 1>, scalar_prefetch = 0 : i64, scratch_operands = 0 : i64, tpu.core_type = #tpu.core_type<tc>, window_params = [{transform_indices = @transform_0, window_bounds = array<i64: 8, 384>}, {pipeline_mode = #tpu.pipeline_mode<synchronous>, transform_indices = @transform_1, window_bounds = array<i64: 384, 128>}, {pipeline_mode = #tpu.pipeline_mode<synchronous>, transform_indices = @transform_2, window_bounds = array<i64: 1, 128>}, {pipeline_mode = #tpu.pipeline_mode<synchronous>, transform_indices = @transform_3, window_bounds = array<i64: 128, 256>}, {pipeline_mode = #tpu.pipeline_mode<synchronous>, transform_indices = @transform_4, window_bounds = array<i64: 1, 256>}, {pipeline_mode = #tpu.pipeline_mode<synchronous>, transform_indices = @transform_5, window_bounds = array<i64: 256, 64>}, {pipeline_mode = #tpu.pipeline_mode<synchronous>, transform_indices = @transform_6, window_bounds = array<i64: 1, 64>}, {pipeline_mode = #tpu.pipeline_mode<synchronous>, transform_indices = @transform_7, window_bounds = array<i64: 64, 4>}, {pipeline_mode = #tpu.pipeline_mode<synchronous>, transform_indices = @transform_8, window_bounds = array<i64: 1, 4>}, {transform_indices = @transform_9, window_bounds = array<i64: 8, 4>}]} {
    %c0 = arith.constant 0 : index
    %c0_0 = arith.constant 0 : index
    %0 = vector.load %arg1[%c0, %c0_0] : memref<8x384xbf16, #tpu.memory_space<vmem>>, vector<8x384xbf16>
    %c0_1 = arith.constant 0 : index
    %c0_2 = arith.constant 0 : index
    %1 = vector.load %arg2[%c0_1, %c0_2] : memref<384x128xbf16, #tpu.memory_space<vmem>>, vector<384x128xbf16>
    %cst = arith.constant dense<0.000000e+00> : vector<8x128xf32>
    %2 = tpu.matmul %0, %1, %cst {dimension_numbers = #tpu.dot_dimension_numbers<[1], [0], [0], [1], [0, 0, 1, 1], [], []>} : vector<8x384xbf16>, vector<384x128xbf16>, vector<8x128xf32> -> vector<8x128xf32>
    %c0_3 = arith.constant 0 : index
    %c0_4 = arith.constant 0 : index
    %3 = vector.load %arg3[%c0_3, %c0_4] : memref<1x128xf32, #tpu.memory_space<vmem>>, vector<1x128xf32>
    %4 = vector.broadcast %3 : vector<1x128xf32> to vector<8x128xf32>
    %5 = arith.addf %2, %4 : vector<8x128xf32>
    %6 = arith.negf %5 : vector<8x128xf32>
    %7 = math.exp %6 : vector<8x128xf32>
    %cst_5 = arith.constant 1.000000e+00 : f32
    %8 = vector.broadcast %cst_5 : f32 to vector<8x128xf32>
    %9 = arith.addf %8, %7 : vector<8x128xf32>
    %10 = arith.divf %8, %9 : vector<8x128xf32>
    %11 = arith.truncf %10 : vector<8x128xf32> to vector<8x128xbf16>
    %c0_6 = arith.constant 0 : index
    %c0_7 = arith.constant 0 : index
    %12 = vector.load %arg4[%c0_6, %c0_7] : memref<128x256xbf16, #tpu.memory_space<vmem>>, vector<128x256xbf16>
    %cst_8 = arith.constant dense<0.000000e+00> : vector<8x256xf32>
    %13 = tpu.matmul %11, %12, %cst_8 {dimension_numbers = #tpu.dot_dimension_numbers<[1], [0], [0], [1], [0, 0, 1, 1], [], []>} : vector<8x128xbf16>, vector<128x256xbf16>, vector<8x256xf32> -> vector<8x256xf32>
    %c0_9 = arith.constant 0 : index
    %c0_10 = arith.constant 0 : index
    %14 = vector.load %arg5[%c0_9, %c0_10] : memref<1x256xf32, #tpu.memory_space<vmem>>, vector<1x256xf32>
    %15 = vector.broadcast %14 : vector<1x256xf32> to vector<8x256xf32>
    %16 = arith.addf %13, %15 : vector<8x256xf32>
    %17 = arith.negf %16 : vector<8x256xf32>
    %18 = math.exp %17 : vector<8x256xf32>
    %cst_11 = arith.constant 1.000000e+00 : f32
    %19 = vector.broadcast %cst_11 : f32 to vector<8x256xf32>
    %20 = arith.addf %19, %18 : vector<8x256xf32>
    %21 = arith.divf %19, %20 : vector<8x256xf32>
    %22 = arith.truncf %21 : vector<8x256xf32> to vector<8x256xbf16>
    %c0_12 = arith.constant 0 : index
    %c0_13 = arith.constant 0 : index
    %23 = vector.load %arg6[%c0_12, %c0_13] : memref<256x64xbf16, #tpu.memory_space<vmem>>, vector<256x64xbf16>
    %cst_14 = arith.constant dense<0.000000e+00> : vector<8x64xf32>
    %24 = tpu.matmul %22, %23, %cst_14 {dimension_numbers = #tpu.dot_dimension_numbers<[1], [0], [0], [1], [0, 0, 1, 1], [], []>} : vector<8x256xbf16>, vector<256x64xbf16>, vector<8x64xf32> -> vector<8x64xf32>
    %c0_15 = arith.constant 0 : index
    %c0_16 = arith.constant 0 : index
    %25 = vector.load %arg7[%c0_15, %c0_16] : memref<1x64xf32, #tpu.memory_space<vmem>>, vector<1x64xf32>
    %26 = vector.broadcast %25 : vector<1x64xf32> to vector<8x64xf32>
    %27 = arith.addf %24, %26 : vector<8x64xf32>
    %28 = arith.negf %27 : vector<8x64xf32>
    %29 = math.exp %28 : vector<8x64xf32>
    %cst_17 = arith.constant 1.000000e+00 : f32
    %30 = vector.broadcast %cst_17 : f32 to vector<8x64xf32>
    %31 = arith.addf %30, %29 : vector<8x64xf32>
    %32 = arith.divf %30, %31 : vector<8x64xf32>
    %33 = arith.truncf %32 : vector<8x64xf32> to vector<8x64xbf16>
    %c0_18 = arith.constant 0 : index
    %c0_19 = arith.constant 0 : index
    %34 = vector.load %arg8[%c0_18, %c0_19] : memref<64x4xbf16, #tpu.memory_space<vmem>>, vector<64x4xbf16>
    %cst_20 = arith.constant dense<0.000000e+00> : vector<8x4xf32>
    %35 = tpu.matmul %33, %34, %cst_20 {dimension_numbers = #tpu.dot_dimension_numbers<[1], [0], [0], [1], [0, 0, 1, 1], [], []>} : vector<8x64xbf16>, vector<64x4xbf16>, vector<8x4xf32> -> vector<8x4xf32>
    %c0_21 = arith.constant 0 : index
    %c0_22 = arith.constant 0 : index
    %36 = vector.load %arg9[%c0_21, %c0_22] : memref<1x4xf32, #tpu.memory_space<vmem>>, vector<1x4xf32>
    %37 = vector.broadcast %36 : vector<1x4xf32> to vector<8x4xf32>
    %38 = arith.addf %35, %37 : vector<8x4xf32>
    %c0_23 = arith.constant 0 : index
    %c0_24 = arith.constant 0 : index
    %39 = vector.load %arg10[%c0_23, %c0_24] : memref<8x4xf32, #tpu.memory_space<vmem>>, vector<8x4xf32>
    tpu.vector_store %arg10[%c0_23, %c0_24], %38 {strides = array<i32>} : memref<8x4xf32, #tpu.memory_space<vmem>>, vector<8x4xf32>,
    return
  }
  func.func @transform_0(%arg0: i32) -> (i32, i32) {
    %c0_i32 = arith.constant 0 : i32
    %c0_i32_0 = arith.constant 0 : i32
    return %arg0, %c0_i32 : i32, i32
  }
  func.func @transform_1(%arg0: i32) -> (i32, i32) {
    %c0_i32 = arith.constant 0 : i32
    %c0_i32_0 = arith.constant 0 : i32
    %c0_i32_1 = arith.constant 0 : i32
    return %c0_i32, %c0_i32_0 : i32, i32
  }
  func.func @transform_2(%arg0: i32) -> (i32, i32) {
    %c0_i32 = arith.constant 0 : i32
    %c0_i32_0 = arith.constant 0 : i32
    %c0_i32_1 = arith.constant 0 : i32
    return %c0_i32, %c0_i32_0 : i32, i32
  }
  func.func @transform_3(%arg0: i32) -> (i32, i32) {
    %c0_i32 = arith.constant 0 : i32
    %c0_i32_0 = arith.constant 0 : i32
    %c0_i32_1 = arith.constant 0 : i32
    return %c0_i32, %c0_i32_0 : i32, i32
  }
  func.func @transform_4(%arg0: i32) -> (i32, i32) {
    %c0_i32 = arith.constant 0 : i32
    %c0_i32_0 = arith.constant 0 : i32
    %c0_i32_1 = arith.constant 0 : i32
    return %c0_i32, %c0_i32_0 : i32, i32
  }
  func.func @transform_5(%arg0: i32) -> (i32, i32) {
    %c0_i32 = arith.constant 0 : i32
    %c0_i32_0 = arith.constant 0 : i32
    %c0_i32_1 = arith.constant 0 : i32
    return %c0_i32, %c0_i32_0 : i32, i32
  }
  func.func @transform_6(%arg0: i32) -> (i32, i32) {
    %c0_i32 = arith.constant 0 : i32
    %c0_i32_0 = arith.constant 0 : i32
    %c0_i32_1 = arith.constant 0 : i32
    return %c0_i32, %c0_i32_0 : i32, i32
  }
  func.func @transform_7(%arg0: i32) -> (i32, i32) {
    %c0_i32 = arith.constant 0 : i32
    %c0_i32_0 = arith.constant 0 : i32
    %c0_i32_1 = arith.constant 0 : i32
    return %c0_i32, %c0_i32_0 : i32, i32
  }
  func.func @transform_8(%arg0: i32) -> (i32, i32) {
    %c0_i32 = arith.constant 0 : i32
    %c0_i32_0 = arith.constant 0 : i32
    %c0_i32_1 = arith.constant 0 : i32
    return %c0_i32, %c0_i32_0 : i32, i32
  }
  func.func @transform_9(%arg0: i32) -> (i32, i32) {
    %c0_i32 = arith.constant 0 : i32
    %c0_i32_0 = arith.constant 0 : i32
    return %arg0, %c0_i32 : i32, i32
  }
}

</mosaic_0001>

<bundles_post_ra>
// kernel: tpu_custom_call.1
= control target key start
LH: loop header
LB: loop body
LE: loop exit
PB: predicated region body
PF: predicated region fallthrough
CT: control target
= control target key end

     0   :  { %14 = vsyncpa [#allocation3], 0  ;;  %s1076_s12 = smov [#allocation2]   ;;  %s1077_s14 = smov 128   ;;  %s1285_s0 = inlined_call_operand.vmem [shape: bf16[8,384], index: 0, kind: input, shape index: {}]   ;;  %s1286_s1 = inlined_call_operand.vmem [shape: bf16[384,128], index: 1, kind: input, shape index: {}]   ;;  %s1287_s2 = inlined_call_operand.vmem [shape: f32[1,128], index: 2, kind: input, shape index: {}]   ;;  %s1288_s3 = inlined_call_operand.hbm [shape: bf16[128,256], index: 3, kind: input, shape index: {}]   ;;  %s1289_s4 = inlined_call_operand.vmem [shape: f32[1,256], index: 4, kind: input, shape index: {}]   ;;  %s1290_s5 = inlined_call_operand.vmem [shape: bf16[256,64], index: 5, kind: input, shape index: {}]   ;;  %s1291_s6 = inlined_call_operand.vmem [shape: f32[1,64], index: 6, kind: input, shape index: {}]   ;;  %s1292_s7 = inlined_call_operand.vmem [shape: bf16[64,4], index: 7, kind: input, shape index: {}]   ;;  %s1293_s8 = inlined_call_operand.vmem [shape: f32[1,4], index: 8, kind: input, shape index: {}]   ;;  %s1294_s9 = inlined_call_operand.vmem [shape: f32[8,4], index: 9, kind: output, shape index: {}]  }
   0x1   :  { %s25_s11 = sshll.u32 %s1288_s3, 4  ;;  %s27_s13 = sshll.u32 %s1076_s12, 4  ;;  %s26_s11 = int_to_ptr.hbm [resolvable:$true] %s25_s11  ;;  %s28_s13 = int_to_ptr.vmem [resolvable:$true] %s27_s13 }
   0x2   :  { %s1078_s15 = smov 8  }
   0x3   :  { %33 = dma.hbm_to_vmem [thread:$0]  %s26_s11, 2048, %s28_s13, [#allocation3], %s1077_s14, %s1077_s14, %s1078_s15  }
   0x4   :  { %1074 = dma.done.wait [#allocation3], 2048  }
   0x5   :  { %1075 = vsyncadd [#allocation3], 4294965248  ;;  %v975_v0 = vld [vmem:[%s1286_s1 + $0x38] sm:$0xff]  ;;  %v974_v3 = vld [vmem:[%s1286_s1 + $0x30] sm:$0xff] }
   0x6   :  { %v983_v1 = vld [vmem:[%s1286_s1 + $0x78] sm:$0xff]  ;;  %258 = vmatpush.bf16.msra.mxu0 %v975_v0  ;;  %v982_v4 = vld [vmem:[%s1286_s1 + $0x70] sm:$0xff]  ;;  %v973_v6 = vld [vmem:[%s1286_s1 + $0x28] sm:$0xff] }
   0x7   :  { %v991_v2 = vld [vmem:[%s1286_s1 + $0xb8] sm:$0xff]  ;;  %271 = vmatpush.bf16.msra.mxu1 %v983_v1  ;;  %v990_v5 = vld [vmem:[%s1286_s1 + $0xb0] sm:$0xff]  ;;  %v981_v7 = vld [vmem:[%s1286_s1 + $0x68] sm:$0xff] }
   0x8   :  { %284 = vmatpush.bf16.msra.mxu2 %v991_v2  ;;  %v989_v8 = vld [vmem:[%s1286_s1 + $0xa8] sm:$0xff]  ;;  %v972_v9 = vld [vmem:[%s1286_s1 + $0x20] sm:$0xff]  ;;  %v971_v12 = vld [vmem:[%s1286_s1 + $0x18] sm:$0xff] }
   0x9   :  { %v980_v10 = vld [vmem:[%s1286_s1 + $0x60] sm:$0xff]  ;;  %v979_v13 = vld [vmem:[%s1286_s1 + $0x58] sm:$0xff]  ;;  %v970_v15 = vld [vmem:[%s1286_s1 + $0x10] sm:$0xff] }
   0xa   :  { %259 = vmatpush.bf16.msra.mxu0 %v974_v3  ;;  %v988_v11 = vld [vmem:[%s1286_s1 + $0xa0] sm:$0xff]  ;;  %v987_v14 = vld [vmem:[%s1286_s1 + $0x98] sm:$0xff]  ;;  %v978_v16 = vld [vmem:[%s1286_s1 + $0x50] sm:$0xff] }
   0xb   :  { %272 = vmatpush.bf16.msra.mxu1 %v982_v4  ;;  %v986_v17 = vld [vmem:[%s1286_s1 + $0x90] sm:$0xff]  ;;  %v969_v18 = vld [vmem:[%s1286_s1 + $0x8] sm:$0xff]  ;;  %v49_v20 = vld [vmem:[%s1285_s0] sm:$0xff] }
   0xc   :  { %285 = vmatpush.bf16.msra.mxu2 %v990_v5  ;;  %v977_v19 = vld [vmem:[%s1286_s1 + $0x48] sm:$0xff]  ;;  %v105_v23 = vunpack.c.l.b16 %v49_v20  ;;  %v106_v24 = vunpack.c.h.b16 %v49_v20  ;;  %v968_v25 = vld [vmem:[%s1286_s1] sm:$0xff]  ;;  %v878_v32 = vld [vmem:[#allocation2 + $0x70] sm:$0xf] }
   0xd   :  { %v985_v21 = vld [vmem:[%s1286_s1 + $0x88] sm:$0xff]  ;;  %v976_v26 = vld [vmem:[%s1286_s1 + $0x40] sm:$0xff]  ;;  %v1007_v33 = vld [vmem:[#allocation2 + $0x74] sm:$0xf0] }
   0xe   :  { %260 = vmatpush.bf16.msra.mxu0 %v973_v6  ;;  %v50_v22 = vld [vmem:[%s1285_s0 + $0x8] sm:$0xf]  ;;  %v984_v28 = vld [vmem:[%s1286_s1 + $0x80] sm:$0xff]  ;;  %v108_v29 = vpack.c.b16 %v105_v23, %v105_v23  ;;  %v109_v30 = vpack.c.b16 %v106_v24, %v106_v24  ;;  %v1006_v34 = vld [vmem:[#allocation2 + $0x74] sm:$0xf]  ;;  %v879_v35 = vor.u32 %v1007_v33, %v878_v32 }
   0xf   :  { %273 = vmatpush.bf16.msra.mxu1 %v981_v7  ;;  %v107_v27 = vunpack.c.l.b16 %v50_v22  ;;  %v880_v36 = vld [vmem:[#allocation2 + $0x78] sm:$0xf0]  ;;  %v870_v38 = vld [vmem:[#allocation2 + $0x60] sm:$0xf]  ;;  %v1005_v39 = vld [vmem:[#allocation2 + $0x64] sm:$0xf0] }
  0x10   :  { %286 = vmatpush.bf16.msra.mxu2 %v989_v8  ;;  %v883_v37 = vor.u32 %v1006_v34, %v880_v36  ;;  %419 = vmatpush.bf16.msra.mxu3 %v879_v35  ;;  %v1004_v40 = vld [vmem:[#allocation2 + $0x64] sm:$0xf]  ;;  %v871_v41 = vor.u32 %v1005_v39, %v870_v38  ;;  %v872_v42 = vld [vmem:[#allocation2 + $0x68] sm:$0xf0]  ;;  %v862_v44 = vld [vmem:[#allocation2 + $0x50] sm:$0xf] }
  0x11   :  { %v110_v31 = vpack.c.b16 %v107_v27, %v107_v27  ;;  %v875_v43 = vor.u32 %v1004_v40, %v872_v42  ;;  %v1003_v45 = vld [vmem:[#allocation2 + $0x54] sm:$0xf0]  ;;  %v1002_v46 = vld [vmem:[#allocation2 + $0x54] sm:$0xf]  ;;  %v864_v48 = vld [vmem:[#allocation2 + $0x58] sm:$0xf0] }
  0x12   :  { %261 = vmatpush.bf16.msra.mxu0 %v972_v9  ;;  %v863_v47 = vor.u32 %v1003_v45, %v862_v44  ;;  %v867_v49 = vor.u32 %v1002_v46, %v864_v48  ;;  %v854_v50 = vld [vmem:[#allocation2 + $0x40] sm:$0xf]  ;;  %v1001_v51 = vld [vmem:[#allocation2 + $0x44] sm:$0xf0]  ;;  %v1000_v52 = vld [vmem:[#allocation2 + $0x44] sm:$0xf] }
  0x13   :  { %274 = vmatpush.bf16.msra.mxu1 %v980_v10  ;;  %v855_v53 = vor.u32 %v1001_v51, %v854_v50  ;;  %v856_v54 = vld [vmem:[#allocation2 + $0x48] sm:$0xf0]  ;;  %v846_v56 = vld [vmem:[#allocation2 + $0x30] sm:$0xf]  ;;  %v999_v57 = vld [vmem:[#allocation2 + $0x34] sm:$0xf0] }
  0x14   :  { %287 = vmatpush.bf16.msra.mxu2 %v988_v11  ;;  %420 = vmatpush.bf16.msra.mxu3 %v871_v41  ;;  %v859_v55 = vor.u32 %v1000_v52, %v856_v54  ;;  %v998_v58 = vld [vmem:[#allocation2 + $0x34] sm:$0xf]  ;;  %v847_v59 = vor.u32 %v999_v57, %v846_v56  ;;  %v848_v60 = vld [vmem:[#allocation2 + $0x38] sm:$0xf0]  ;;  %v838_v61 = vld [vmem:[#allocation2 + $0x20] sm:$0xf] }
  0x15   :  { %v997_v62 = vld [vmem:[#allocation2 + $0x24] sm:$0xf0]  ;;  %v851_v63 = vor.u32 %v998_v58, %v848_v60  ;;  %v996_v0 = vld [vmem:[#allocation2 + $0x24] sm:$0xf]  ;;  %v840_v1 = vld [vmem:[#allocation2 + $0x28] sm:$0xf0] }
  0x16   :  { %262 = vmatpush.bf16.msra.mxu0 %v971_v12  ;;  %v839_v2 = vor.u32 %v997_v62, %v838_v61  ;;  %v843_v3 = vor.u32 %v996_v0, %v840_v1  ;;  %v830_v4 = vld [vmem:[#allocation2 + $0x10] sm:$0xf]  ;;  %v995_v5 = vld [vmem:[#allocation2 + $0x14] sm:$0xf0]  ;;  %v994_v6 = vld [vmem:[#allocation2 + $0x14] sm:$0xf] }
  0x17   :  { %275 = vmatpush.bf16.msra.mxu1 %v979_v13  ;;  %v832_v7 = vld [vmem:[#allocation2 + $0x18] sm:$0xf0]  ;;  %v1031_v8 = vld [vmem:[%s1287_s2] ss:$0 sm:$0xff]  ;;  %v831_v9 = vor.u32 %v995_v5, %v830_v4  ;;  %v993_v12 = vld [vmem:[#allocation2 + $0x4] sm:$0xf0] }
  0x18   :  { %288 = vmatpush.bf16.msra.mxu2 %v987_v14  ;;  %421 = vmatpush.bf16.msra.mxu3 %v863_v47  ;;  %v835_v10 = vor.u32 %v994_v6, %v832_v7  ;;  %v822_v11 = vld [vmem:[#allocation2] sm:$0xf]  ;;  %v992_v13 = vld [vmem:[#allocation2 + $0x4] sm:$0xf]  ;;  %v824_v14 = vld [vmem:[#allocation2 + $0x8] sm:$0xf0] }
  0x19   :  { %v1023_v40 = vld [vmem:[%s1290_s5 + $0x78] sm:$0xff]  ;;  %v1022_v41 = vld [vmem:[%s1290_s5 + $0x70] sm:$0xff]  ;;  %v1020_v45 = vld [vmem:[%s1290_s5 + $0x60] sm:$0xff] }
  0x1a   :  { %263 = vmatpush.bf16.msra.mxu0 %v970_v15  ;;  %v1015_v42 = vld [vmem:[%s1290_s5 + $0x38] sm:$0xff]  ;;  %v1014_v44 = vld [vmem:[%s1290_s5 + $0x30] sm:$0xff]  ;;  %v1013_v46 = vld [vmem:[%s1290_s5 + $0x28] sm:$0xff] }
  0x1b   :  { %276 = vmatpush.bf16.msra.mxu1 %v978_v16  ;;  %v1019_v47 = vld [vmem:[%s1290_s5 + $0x58] sm:$0xff]  ;;  %v1012_v48 = vld [vmem:[%s1290_s5 + $0x20] sm:$0xff]  ;;  %v1017_v51 = vld [vmem:[%s1290_s5 + $0x48] sm:$0xff] }
  0x1c   :  { %289 = vmatpush.bf16.msra.mxu2 %v986_v17  ;;  %422 = vmatpush.bf16.msra.mxu3 %v855_v53  ;;  %v1011_v50 = vld [vmem:[%s1290_s5 + $0x18] sm:$0xff]  ;;  %v1010_v52 = vld [vmem:[%s1290_s5 + $0x10] sm:$0xff]  ;;  %v333_v53 = vld [vmem:[%s1289_s4] sm:$0x3] }
  0x1d   :  { %v1016_v54 = vld [vmem:[%s1290_s5 + $0x40] sm:$0xff]  ;;  %v336_v56 = vperm.slane %v333_v53, 1  ;;  %v335_v61 = vperm.slane %v333_v53, 0 }
  0x1e   :  { %264 = vmatpush.bf16.msra.mxu0 %v969_v18  ;;  %v823_v18 = vor.u32 %v993_v12, %v822_v11 }
  0x1f   :  { %277 = vmatpush.bf16.msra.mxu1 %v977_v19  ;;  %v827_v19 = vor.u32 %v992_v13, %v824_v14 }
  0x20   :  { %290 = vmatpush.bf16.msra.mxu2 %v985_v21  ;;  %423 = vmatpush.bf16.msra.mxu3 %v847_v59  ;;  %v1008_v59 = vld [vmem:[%s1290_s5] sm:$0xff] }
  0x22   :  { %265 = vmatpush.bf16.msra.mxu0 %v968_v25 }
  0x23   :  { %278 = vmatpush.bf16.msra.mxu1 %v976_v26 }
  0x24   :  { %291 = vmatpush.bf16.msra.mxu2 %v984_v28  ;;  %424 = vmatpush.bf16.msra.mxu3 %v839_v2 }
  0x25   :  { %266 = vmatmul.bf16.vlgmr.msra.gmra.mxu0 %v108_v29 }
  0x26   :  { %279 = vmatmul.bf16.vlgmr.msra.gmra.mxu1 %v109_v30  ;;  %432 = vmatpush.bf16.msrb.mxu0 %v883_v37 }
  0x27   :  { %292 = vmatmul.bf16.vlgmr.msra.gmra.mxu2 %v110_v31  ;;  %617 = vmatpush.bf16.msrb.mxu1 %v1015_v42 }
  0x28   :  { %425 = vmatpush.bf16.msra.mxu3 %v831_v9  ;;  %630 = vmatpush.bf16.msrb.mxu2 %v1023_v40 }
  0x2a   :  { %433 = vmatpush.bf16.msrb.mxu0 %v875_v43  ;;  %v1021_v43 = vld [vmem:[%s1290_s5 + $0x68] sm:$0xff] }
  0x2b   :  { %618 = vmatpush.bf16.msrb.mxu1 %v1014_v44 }
  0x2c   :  { %426 = vmatpush.bf16.msra.mxu3 %v823_v18  ;;  %631 = vmatpush.bf16.msrb.mxu2 %v1022_v41 }
  0x2e   :  { %434 = vmatpush.bf16.msrb.mxu0 %v867_v49  ;;  %v1018_v49 = vld [vmem:[%s1290_s5 + $0x50] sm:$0xff] }
  0x2f   :  { %619 = vmatpush.bf16.msrb.mxu1 %v1013_v46 }
  0x30   :  { %632 = vmatpush.bf16.msrb.mxu2 %v1021_v43 }
  0x32   :  { %435 = vmatpush.bf16.msrb.mxu0 %v859_v55  ;;  %v1009_v55 = vld [vmem:[%s1290_s5 + $0x8] sm:$0xff] }
  0x33   :  { %620 = vmatpush.bf16.msrb.mxu1 %v1012_v48 }
  0x34   :  { %633 = vmatpush.bf16.msrb.mxu2 %v1020_v45 }
  0x36   :  { %436 = vmatpush.bf16.msrb.mxu0 %v851_v63 }
  0x37   :  { %621 = vmatpush.bf16.msrb.mxu1 %v1011_v50 }
  0x38   :  { %634 = vmatpush.bf16.msrb.mxu2 %v1019_v47 }
  0x3a   :  { %437 = vmatpush.bf16.msrb.mxu0 %v843_v3 }
  0x3b   :  { %622 = vmatpush.bf16.msrb.mxu1 %v1010_v52 }
  0x3c   :  { %635 = vmatpush.bf16.msrb.mxu2 %v1018_v49 }
  0x3e   :  { %438 = vmatpush.bf16.msrb.mxu0 %v835_v10 }
  0x3f   :  { %623 = vmatpush.bf16.msrb.mxu1 %v1009_v55 }
  0x40   :  { %636 = vmatpush.bf16.msrb.mxu2 %v1017_v51 }
  0x42   :  { %439 = vmatpush.bf16.msrb.mxu0 %v827_v19 }
  0x43   :  { %624 = vmatpush.bf16.msrb.mxu1 %v1008_v59 }
  0x44   :  { %637 = vmatpush.bf16.msrb.mxu2 %v1016_v54  ;;  %v1033_v54 = vld [vmem:[%s1293_s8] ss:$0 sm:$0xff] }
  0xa2   :  { %v267_v15 = vpop.f32.mrf.mxu0 }
  0xa3   :  { %v280_v16 = vpop.f32.mrf.mxu1  ;;  %v268_v17 = vadd.f32 %v1031_v8, %v267_v15 }
  0xa5   :  { %v281_v20 = vadd.f32 %v280_v16, %v268_v17 }
  0xaa   :  { %v293_v21 = vpop.f32.mrf.mxu2  ;;  %v269_v23 = vpop.f32.mrf.mxu0 }
  0xab   :  { %v294_v22 = vadd.f32 %v293_v21, %v281_v20  ;;  %v282_v24 = vpop.f32.mrf.mxu1 }
  0xad   :  { %v819_v25 = vmul.f32 -1.442695, %v294_v22 }
  0xaf   :  { %1034 = vpow2.f32 %v819_v25 }
  0xb2   :  { %v295_v26 = vpop.f32.mrf.mxu2 }
  0xb5   :  { %v1035_v27 = vpop.eup %1034 }
  0xb6   :  { %v300_v28 = vadd.f32 1.0, %v1035_v27 }
  0xb8   :  { %1036 = vrcp.f32 %v300_v28  ;;  %v312_v32 = vand.u32 2147483648, %v300_v28  ;;  %v310_v34 = vand.u32 2147483647, %v300_v28  ;;  %vm306_vm1 = vweird.f32 %v300_v28 }
  0xba   :  { %v313_v36 = vor.u32 1.1754944e-38, %v312_v32  ;;  %vm311_vm3 = vcmp.eq.f32.partialorder %v310_v34, 8.507059e+37  ;;  %v1024_v32 = vld [vmem:[%s1292_s7] sm:$0xff] }
  0xbe   :  { %v1037_v29 = vpop.eup %1036 }
  0xbf   :  { %v302_v30 = vmul.f32 %v1037_v29, %v300_v28  ;;  %vm307_vm0 = vweird.f32 %v1037_v29 }
  0xc0   :  { %vm308_vm2 = vmor %vm306_vm1, %vm307_vm0  ;;  %vm699_vm0 = vcmask 523264   ;;  %vm716_vm1 = vcmask 31744  }
  0xc1   :  { %v303_v31 = vsub.f32 1.0, %v302_v30  ;;  %v1026_v30 = vld [vmem:[%s1292_s7 + $0x10] sm:$0xff] }
  0xc3   :  { %v304_v33 = vmul.f32 %v1037_v29, %v303_v31  ;;  %v1025_v31 = vld [vmem:[%s1292_s7 + $0x8] sm:$0xff] }
  0xc5   :  { %v305_v35 = vadd.f32 %v1037_v29, %v304_v33  ;;  %v1032_v33 = vld [vmem:[%s1291_s6] ss:$0 sm:$0xff] }
  0xc7   :  { %v309_v37 = vsel %vm308_vm2, %v1037_v29, %v305_v35  ;;  %v1027_v29 = vld [vmem:[%s1292_s7 + $0x18] sm:$0xff] }
  0xc8   :  { %v314_v38 = vsel %vm311_vm3, %v313_v36, %v309_v37  ;;  %707 = vmatpush.bf16.msrb.mxu3 %v1027_v29 }
  0xc9   :  { %v316_v39 = vpack.c.bf16 %v314_v38, %v314_v38 }
  0xcb   :  { %427 = vmatmul.bf16.vlgmr.msra.gmra.mxu3 %v316_v39  ;;  %440 = vmatmul.bf16.vlgmr.msrb.gmra.mxu0 %v316_v39 }
  0xcc   :  { %708 = vmatpush.bf16.msrb.mxu3 %v1026_v30 }
  0xd0   :  { %709 = vmatpush.bf16.msrb.mxu3 %v1025_v31 }
  0xd4   :  { %710 = vmatpush.bf16.msrb.mxu3 %v1024_v32 }
 0x148   :  { %v441_v57 = vpop.f32.mrf.mxu0 }
 0x149   :  { %v442_v58 = vadd.f32 %v441_v57, %v336_v56 }
 0x14b   :  { %v885_v60 = vmul.f32 -1.442695, %v442_v58 }
 0x14d   :  { %1038 = vpow2.f32 %v885_v60 }
 0x14e   :  { %v428_v62 = vpop.f32.mrf.mxu3 }
 0x14f   :  { %v429_v63 = vadd.f32 %v428_v62, %v335_v61 }
 0x150   :  { %v443_v0 = vpop.f32.mrf.mxu0 }
 0x151   :  { %v884_v1 = vmul.f32 -1.442695, %v429_v63 }
 0x153   :  { %v1039_v2 = vpop.eup %1038  ;;  %1040 = vpow2.f32 %v884_v1 }
 0x154   :  { %v452_v3 = vadd.f32 1.0, %v1039_v2 }
 0x156   :  { %1042 = vrcp.f32 %v452_v3  ;;  %v430_v4 = vpop.f32.mrf.mxu3  ;;  %v479_v10 = vand.u32 2147483648, %v452_v3  ;;  %v477_v12 = vand.u32 2147483647, %v452_v3  ;;  %vm473_vm5 = vweird.f32 %v452_v3 }
 0x158   :  { %v480_v16 = vor.u32 1.1754944e-38, %v479_v10  ;;  %vm478_vm7 = vcmp.eq.f32.partialorder %v477_v12, 8.507059e+37 }
 0x159   :  { %v1041_v5 = vpop.eup %1040 }
 0x15a   :  { %v451_v6 = vadd.f32 1.0, %v1041_v5 }
 0x15c   :  { %v1043_v7 = vpop.eup %1042  ;;  %1044 = vrcp.f32 %v451_v6  ;;  %v464_v20 = vand.u32 2147483648, %v451_v6  ;;  %v462_v23 = vand.u32 2147483647, %v451_v6  ;;  %vm458_vm9 = vweird.f32 %v451_v6 }
 0x15d   :  { %v469_v8 = vmul.f32 %v1043_v7, %v452_v3  ;;  %vm474_vm4 = vweird.f32 %v1043_v7 }
 0x15e   :  { %vm475_vm6 = vmor %vm473_vm5, %vm474_vm4  ;;  %v465_v25 = vor.u32 1.1754944e-38, %v464_v20  ;;  %vm463_vm11 = vcmp.eq.f32.partialorder %v462_v23, 8.507059e+37 }
 0x15f   :  { %v470_v9 = vsub.f32 1.0, %v469_v8 }
 0x161   :  { %v471_v11 = vmul.f32 %v1043_v7, %v470_v9 }
 0x162   :  { %v1045_v13 = vpop.eup %1044 }
 0x163   :  { %v472_v14 = vadd.f32 %v1043_v7, %v471_v11  ;;  %v454_v15 = vmul.f32 %v1045_v13, %v451_v6  ;;  %vm459_vm8 = vweird.f32 %v1045_v13 }
 0x164   :  { %vm460_vm10 = vmor %vm458_vm9, %vm459_vm8 }
 0x165   :  { %v476_v17 = vsel %vm475_vm6, %v1043_v7, %v472_v14  ;;  %v455_v18 = vsub.f32 1.0, %v454_v15 }
 0x166   :  { %v481_v19 = vsel %vm478_vm7, %v480_v16, %v476_v17 }
 0x167   :  { %v484_v21 = vpack.c.bf16 %v481_v19, %v481_v19  ;;  %v456_v22 = vmul.f32 %v1045_v13, %v455_v18 }
 0x169   :  { %638 = vmatmul.bf16.vlgmr.msrb.gmra.mxu2 %v484_v21  ;;  %v457_v24 = vadd.f32 %v1045_v13, %v456_v22 }
 0x16b   :  { %v461_v26 = vsel %vm460_vm10, %v1045_v13, %v457_v24 }
 0x16c   :  { %v466_v27 = vsel %vm463_vm11, %v465_v25, %v461_v26 }
 0x16d   :  { %v483_v28 = vpack.c.bf16 %v466_v27, %v466_v27 }
 0x16f   :  { %625 = vmatmul.bf16.vlgmr.msrb.gmra.mxu1 %v483_v28 }
 0x1ec   :  { %v626_v34 = vpop.f32.mrf.mxu1  ;;  %v639_v35 = vpop.f32.mrf.mxu2 }
 0x1ed   :  { %v627_v36 = vadd.f32 %v1032_v33, %v626_v34 }
 0x1ef   :  { %v640_v37 = vadd.f32 %v639_v35, %v627_v36 }
 0x1f1   :  { %v950_v38 = vmul.f32 -1.442695, %v640_v37 }
 0x1f3   :  { %1046 = vpow2.f32 %v950_v38 }
 0x1f4   :  { %v628_v39 = vpop.f32.mrf.mxu1  ;;  %v641_v40 = vpop.f32.mrf.mxu2 }
 0x1f9   :  { %v1047_v41 = vpop.eup %1046 }
 0x1fa   :  { %v646_v42 = vadd.f32 1.0, %v1047_v41 }
 0x1fc   :  { %1048 = vrcp.f32 %v646_v42  ;;  %v658_v46 = vand.u32 2147483648, %v646_v42  ;;  %v656_v48 = vand.u32 2147483647, %v646_v42  ;;  %vm652_vm13 = vweird.f32 %v646_v42 }
 0x1fe   :  { %v659_v50 = vor.u32 1.1754944e-38, %v658_v46  ;;  %vm657_vm15 = vcmp.eq.f32.partialorder %v656_v48, 8.507059e+37 }
 0x202   :  { %v1049_v43 = vpop.eup %1048 }
 0x203   :  { %v648_v44 = vmul.f32 %v1049_v43, %v646_v42  ;;  %vm653_vm12 = vweird.f32 %v1049_v43 }
 0x204   :  { %vm654_vm14 = vmor %vm652_vm13, %vm653_vm12 }
 0x205   :  { %v649_v45 = vsub.f32 1.0, %v648_v44 }
 0x207   :  { %v650_v47 = vmul.f32 %v1049_v43, %v649_v45 }
 0x209   :  { %v651_v49 = vadd.f32 %v1049_v43, %v650_v47 }
 0x20b   :  { %v655_v51 = vsel %vm654_vm14, %v1049_v43, %v651_v49 }
 0x20c   :  { %v660_v52 = vsel %vm657_vm15, %v659_v50, %v655_v51 }
 0x20d   :  { %v662_v53 = vpack.c.bf16 %v660_v52, %v660_v52 }
 0x20f   :  { %967 = vmatmul.msk.bf16.vlgmr.msrb.gmra.mxu3 %vm699_vm0, %v662_v53 }
 0x292   :  { %v712_v55 = vpop.f32.mrf.mxu3 }
 0x293   :  { %v713_v56 = vadd.f32 %v1033_v54, %v712_v55 }
 0x295   :  { %717 = vst.msk [vmem:[%s1294_s9] sm:$0xff] %vm716_vm1, %v713_v56 }
 0x29a   :  { %v714_v57 = vpop.f32.mrf.mxu3 }
 0x29b   :  { %722 = vsyncpa [#allocation3], 1 }

</bundles_post_ra>
